<compile_context>
chip_gen: v7x
topology: tpu7x:2x2x1
jax: 0.10.0
libtpu: 0.0.40
codegen_flags: <defaults>
</compile_context>

<pallas_src>
import jax
import jax.numpy as jnp
from jax.experimental import pallas as pl
from jax.experimental.pallas import tpu as pltpu

B, H_IN, H_DEC, D_BITS, N_CLASSES = 8, 32, 32, 16, 8
ENC_ENTROPY_COEFF = 0.1
BASELINE = 0.0  # mean_baseline starts at 0.0 (runavg baseline_type)

SLAB_W = 128  # lane-dense width for the packed input, weights and stats slabs

# --- packed input slab column layout [B, SLAB_W] ---
X_ENC0 = 0                       # encoder_input          lanes [0, 32)
X_DEC0 = 32                      # decoder_input          lanes [32, 64)
CLS0 = 64                        # one-hot labels / decoder logits lanes [64, 72)
BIT0 = 80                        # uniforms / scores / z  lanes [80, 96)
ONE_LANE = 127                   # constant 1.0 (bias folding)

# --- packed stats slab column layout [B, SLAB_W] ---
COL_LOSS = 0                     # per-sample cross-entropy
COL_ENC_H = 1                    # encoder entropy
COL_DEC_H = 2                    # decoder entropy
COL_ACC = 3                      # accuracy
COL_LOGPROB = 4                  # Bernoulli sample log-prob (summed over bits)
COL_SURR = 5                     # per-sample surrogate (policy + entropy_loss + loss)
COL_FULL = 6                     # full_loss mean, replicated across rows
COL_SCORES0 = BIT0               # encoder Bernoulli logits, lanes [80, 96)


def _softplus(x):
    # numerically stable softplus, elementwise (VPU/EUP)
    return jnp.maximum(x, 0.0) + jnp.log1p(jnp.exp(-jnp.abs(x)))


def sfe_kernel(x_ref, w_ref, stats_ref):
    x = x_ref[...]                                    # [B, 128] packed activations
    w1 = w_ref[0:SLAB_W, :]                           # encoder + decoder-x (sublane slice, aligned)
    w2 = w_ref[SLAB_W:2 * SLAB_W, :]                  # decoder-z

    lane = jax.lax.broadcasted_iota(jnp.int32, (B, SLAB_W), 1)
    mask_bits = (lane >= BIT0) & (lane < BIT0 + D_BITS)
    mask_cls = (lane >= CLS0) & (lane < CLS0 + N_CLASSES)

    # ---- fused encoder / decoder-x matmul: one MXU pass, disjoint output lanes ----
    # scores land on bit lanes [80,96); x-part of decoder logits on class lanes [64,72);
    # biases folded via the constant-1 lane.
    h1 = jnp.dot(x, w1, preferred_element_type=jnp.float32)   # [B, 128]

    # ---------------- encoder: Bernoulli over bits ----------------
    p = jax.nn.sigmoid(h1)
    sp_pos = _softplus(h1)
    sp_neg = _softplus(-h1)

    # uniforms were packed at the bit lanes of x -> compare in place, no realignment
    z = jnp.where(mask_bits & (x < p), 1.0, 0.0)              # discrete_latent_z, zero elsewhere

    # Bernoulli(logits=scores).log_prob(z).sum(dim=1)
    nll_bits = z * sp_neg + (1.0 - z) * sp_pos
    sample_logprob = -jnp.sum(jnp.where(mask_bits, nll_bits, 0.0), axis=1, keepdims=True)  # [B,1]
    # encoder entropy: sum_b [ p*softplus(-l) + (1-p)*softplus(l) ]
    ent_bits = p * sp_neg + (1.0 - p) * sp_pos
    enc_entropy = jnp.sum(jnp.where(mask_bits, ent_bits, 0.0), axis=1, keepdims=True)      # [B,1]

    # ---------------- decoder: logits = x-part (already in h1) + z-part ----------------
    logits = h1 + jnp.dot(z, w2, preferred_element_type=jnp.float32)   # class lanes valid

    masked_logits = jnp.where(mask_cls, logits, jnp.float32(-1e30))
    row_max = jnp.max(masked_logits, axis=1, keepdims=True)
    shifted = logits - row_max
    exp_shifted = jnp.where(mask_cls, jnp.exp(shifted), 0.0)
    sum_exp = jnp.sum(exp_shifted, axis=1, keepdims=True)
    log_softmax = shifted - jnp.log(sum_exp)                   # valid on class lanes
    softmax = exp_shifted / sum_exp                            # zero off class lanes

    onehot = jnp.where(mask_cls, x, 0.0)                       # host-built one-hot at class lanes
    loss_vec = -jnp.sum(onehot * log_softmax, axis=1, keepdims=True)     # [B,1] per-sample CE
    dec_entropy = -jnp.sum(softmax * log_softmax, axis=1, keepdims=True) # [B,1]
    label_logit = jnp.sum(onehot * logits, axis=1, keepdims=True)
    acc = (label_logit >= row_max).astype(jnp.float32)                   # [B,1]

    # ---------------- score-function estimator surrogate ----------------
    policy_loss = (loss_vec - BASELINE) * sample_logprob
    entropy_loss = -enc_entropy * ENC_ENTROPY_COEFF
    per_sample = policy_loss + entropy_loss + loss_vec                   # [B,1]
    full_loss = jnp.sum(per_sample, axis=0, keepdims=True) * (1.0 / B)   # [1,1] mean
    full_col = jnp.broadcast_to(full_loss, (B, 1))

    # ---------------- stats slab: whole-vreg selects, one unmasked [8,128] store ----------------
    stats = jnp.where(mask_bits, h1, 0.0)                      # scores at lanes [80,96)
    stats = jnp.where(lane == COL_LOSS, loss_vec, stats)
    stats = jnp.where(lane == COL_ENC_H, enc_entropy, stats)
    stats = jnp.where(lane == COL_DEC_H, dec_entropy, stats)
    stats = jnp.where(lane == COL_ACC, acc, stats)
    stats = jnp.where(lane == COL_LOGPROB, sample_logprob, stats)
    stats = jnp.where(lane == COL_SURR, per_sample, stats)
    stats = jnp.where(lane == COL_FULL, full_col, stats)
    stats_ref[...] = stats


def init_params(key):
    k1, k2, k3, k4, k5 = jax.random.split(key, 5)
    w_enc = 0.2 * jax.random.normal(k1, (H_IN, D_BITS), jnp.float32)
    b_enc = 0.05 * jax.random.normal(k2, (1, D_BITS), jnp.float32)
    w_z = 0.2 * jax.random.normal(k3, (D_BITS, N_CLASSES), jnp.float32)
    w_d = 0.2 * jax.random.normal(k4, (H_DEC, N_CLASSES), jnp.float32)
    b_dec = 0.05 * jax.random.normal(k5, (1, N_CLASSES), jnp.float32)
    return (w_enc, b_enc, w_z, w_d, b_dec)


def pack_params(params):
    """Pack all weights into one lane-dense [256, 128] slab. Done ONCE, outside the call path."""
    w_enc, b_enc, w_z, w_d, b_dec = params
    w1 = jnp.zeros((SLAB_W, SLAB_W), jnp.float32)
    w1 = w1.at[X_ENC0:X_ENC0 + H_IN, BIT0:BIT0 + D_BITS].set(w_enc)      # encoder weight
    w1 = w1.at[ONE_LANE, BIT0:BIT0 + D_BITS].set(b_enc[0])               # encoder bias (folded)
    w1 = w1.at[X_DEC0:X_DEC0 + H_DEC, CLS0:CLS0 + N_CLASSES].set(w_d)    # decoder x-part weight
    w1 = w1.at[ONE_LANE, CLS0:CLS0 + N_CLASSES].set(b_dec[0])            # decoder bias (folded)
    w2 = jnp.zeros((SLAB_W, SLAB_W), jnp.float32)
    w2 = w2.at[BIT0:BIT0 + D_BITS, CLS0:CLS0 + N_CLASSES].set(w_z)       # decoder z-part weight
    return jnp.concatenate([w1, w2], axis=0)                             # [256, 128]


def bitvector_sfe_forward(encoder_input, decoder_input, labels, w_slab, key):
    """Forward pass; returns {'loss': scalar, 'log': {...}} mirroring the PyTorch module."""
    # host-drawn uniforms for the in-kernel Bernoulli sample (replaces the TPU hardware PRNG,
    # which has no CPU/interpret lowering)
    u = jax.random.uniform(key, (B, D_BITS), jnp.float32)
    onehot = jax.nn.one_hot(labels, N_CLASSES, dtype=jnp.float32)

    # single concat builds the lane-dense [B, 128] activation slab
    x_in = jnp.concatenate(
        [encoder_input, decoder_input,                       # lanes 0..63
         onehot,                                             # lanes 64..71
         jnp.zeros((B, BIT0 - (CLS0 + N_CLASSES)), jnp.float32),
         u,                                                  # lanes 80..95
         jnp.zeros((B, ONE_LANE - (BIT0 + D_BITS)), jnp.float32),
         jnp.ones((B, 1), jnp.float32)],                     # lane 127 = 1.0 (bias folding)
        axis=1)

    stats = pl.pallas_call(
        sfe_kernel,
        in_specs=[
            pl.BlockSpec(memory_space=pltpu.MemorySpace.VMEM),  # packed activations [B,128]
            pl.BlockSpec(memory_space=pltpu.MemorySpace.VMEM),  # packed weights [256,128]
        ],
        out_specs=pl.BlockSpec(memory_space=pltpu.MemorySpace.VMEM),
        out_shape=jax.ShapeDtypeStruct((B, SLAB_W), jnp.float32),
        cost_estimate=pl.CostEstimate(
            flops=2 * 2 * B * SLAB_W * SLAB_W,
            transcendentals=6 * B * SLAB_W,
            bytes_accessed=4 * (B * SLAB_W + 2 * SLAB_W * SLAB_W + B * SLAB_W)),
    )(x_in, w_slab)

    scores = stats[:, COL_SCORES0:COL_SCORES0 + D_BITS]
    loss_vec = stats[:, COL_LOSS]
    enc_h = stats[:, COL_ENC_H]
    dec_h = stats[:, COL_DEC_H]
    acc = stats[:, COL_ACC]
    full_loss = stats[0, COL_FULL]

    logs = {
        "acc": jnp.mean(acc),
        "baseline": jnp.float32(BASELINE),
        "loss": jnp.mean(loss_vec),
        "encoder_entropy": jnp.mean(enc_h),
        "decoder_entropy": jnp.mean(dec_h),
        "distr_logits": scores,   # stands in for the Bernoulli distribution object
    }
    return {"loss": full_loss, "log": logs}


if __name__ == "__main__":
    key = jax.random.PRNGKey(0)
    k_param, k_enc, k_dec, k_lab, k_sample = jax.random.split(key, 5)

    params = init_params(k_param)
    w_slab = pack_params(params)   # packed once, outside the per-call path
    encoder_input = jax.random.normal(k_enc, (B, H_IN), jnp.float32)
    decoder_input = jax.random.normal(k_dec, (B, H_DEC), jnp.float32)
    labels = jax.random.randint(k_lab, (B,), 0, N_CLASSES)

    out = bitvector_sfe_forward(encoder_input, decoder_input, labels, w_slab, k_sample)
    jax.block_until_ready(out["loss"])
    jax.block_until_ready(out["log"]["loss"])
    print("KERNEL_OK")
</pallas_src>

<mosaic_0001>
module attributes {stable_mosaic.version = 11 : i64} {
  func.func @sfe_kernel(%arg0: memref<8x128xf32, #tpu.memory_space<vmem>>, %arg1: memref<256x128xf32, #tpu.memory_space<vmem>>, %arg2: memref<8x128xf32, #tpu.memory_space<vmem>>) attributes {dimension_semantics = [], scalar_prefetch = 0 : i64, scratch_operands = 0 : i64, tpu.core_type = #tpu.core_type<tc>} {
    %c0 = arith.constant 0 : index
    %c0_0 = arith.constant 0 : index
    %0 = vector.load %arg0[%c0, %c0_0] : memref<8x128xf32, #tpu.memory_space<vmem>>, vector<8x128xf32>
    %c0_1 = arith.constant 0 : index
    %c0_2 = arith.constant 0 : index
    %1 = vector.load %arg1[%c0_1, %c0_2] : memref<256x128xf32, #tpu.memory_space<vmem>>, vector<128x128xf32>
    %c128 = arith.constant 128 : index
    %c0_3 = arith.constant 0 : index
    %2 = vector.load %arg1[%c128, %c0_3] : memref<256x128xf32, #tpu.memory_space<vmem>>, vector<128x128xf32>
    %3 = tpu.iota {dimensions = array<i32: 1>} : vector<8x128xi32>
    %c80_i32 = arith.constant 80 : i32
    %4 = vector.broadcast %c80_i32 : i32 to vector<8x128xi32>
    %5 = arith.cmpi sge, %3, %4 : vector<8x128xi32>
    %c96_i32 = arith.constant 96 : i32
    %6 = vector.broadcast %c96_i32 : i32 to vector<8x128xi32>
    %7 = arith.cmpi slt, %3, %6 : vector<8x128xi32>
    %8 = arith.andi %5, %7 : vector<8x128xi1>
    %c64_i32 = arith.constant 64 : i32
    %9 = vector.broadcast %c64_i32 : i32 to vector<8x128xi32>
    %10 = arith.cmpi sge, %3, %9 : vector<8x128xi32>
    %c72_i32 = arith.constant 72 : i32
    %11 = vector.broadcast %c72_i32 : i32 to vector<8x128xi32>
    %12 = arith.cmpi slt, %3, %11 : vector<8x128xi32>
    %13 = arith.andi %10, %12 : vector<8x128xi1>
    %cst = arith.constant dense<0.000000e+00> : vector<8x128xf32>
    %14 = tpu.matmul %0, %1, %cst {dimension_numbers = #tpu.dot_dimension_numbers<[1], [0], [0], [1], [0, 0, 1, 1], [], []>} : vector<8x128xf32>, vector<128x128xf32>, vector<8x128xf32> -> vector<8x128xf32>
    %15 = arith.negf %14 : vector<8x128xf32>
    %16 = math.exp %15 : vector<8x128xf32>
    %cst_4 = arith.constant 1.000000e+00 : f32
    %17 = vector.broadcast %cst_4 : f32 to vector<8x128xf32>
    %18 = arith.addf %17, %16 : vector<8x128xf32>
    %19 = arith.divf %17, %18 : vector<8x128xf32>
    %cst_5 = arith.constant 0.000000e+00 : f32
    %20 = vector.broadcast %cst_5 : f32 to vector<8x128xf32>
    %21 = arith.maximumf %14, %20 : vector<8x128xf32>
    %22 = math.absf %14 : vector<8x128xf32>
    %cst_6 = arith.constant 0.000000e+00 : f32
    %23 = vector.broadcast %cst_6 : f32 to vector<8x128xf32>
    %24 = arith.subf %23, %22 : vector<8x128xf32>
    %25 = math.exp %24 : vector<8x128xf32>
    %26 = math.log1p %25 : vector<8x128xf32>
    %27 = arith.addf %21, %26 : vector<8x128xf32>
    %cst_7 = arith.constant 0.000000e+00 : f32
    %28 = vector.broadcast %cst_7 : f32 to vector<8x128xf32>
    %29 = arith.subf %28, %14 : vector<8x128xf32>
    %cst_8 = arith.constant 0.000000e+00 : f32
    %30 = vector.broadcast %cst_8 : f32 to vector<8x128xf32>
    %31 = arith.maximumf %29, %30 : vector<8x128xf32>
    %32 = math.absf %29 : vector<8x128xf32>
    %cst_9 = arith.constant 0.000000e+00 : f32
    %33 = vector.broadcast %cst_9 : f32 to vector<8x128xf32>
    %34 = arith.subf %33, %32 : vector<8x128xf32>
    %35 = math.exp %34 : vector<8x128xf32>
    %36 = math.log1p %35 : vector<8x128xf32>
    %37 = arith.addf %31, %36 : vector<8x128xf32>
    %38 = arith.cmpf olt, %0, %19 : vector<8x128xf32>
    %39 = arith.andi %8, %38 : vector<8x128xi1>
    %cst_10 = arith.constant 1.000000e+00 : f32
    %cst_11 = arith.constant 0.000000e+00 : f32
    %40 = vector.broadcast %cst_10 : f32 to vector<8x128xf32>
    %41 = vector.broadcast %cst_11 : f32 to vector<8x128xf32>
    %42 = arith.select %39, %40, %41 : vector<8x128xi1>, vector<8x128xf32>
    %43 = arith.mulf %42, %37 : vector<8x128xf32>
    %cst_12 = arith.constant 1.000000e+00 : f32
    %44 = vector.broadcast %cst_12 : f32 to vector<8x128xf32>
    %45 = arith.subf %44, %42 : vector<8x128xf32>
    %46 = arith.mulf %45, %27 : vector<8x128xf32>
    %47 = arith.addf %43, %46 : vector<8x128xf32>
    %cst_13 = arith.constant 0.000000e+00 : f32
    %48 = vector.broadcast %cst_13 : f32 to vector<8x128xf32>
    %49 = arith.select %8, %47, %48 : vector<8x128xi1>, vector<8x128xf32>
    %cst_14 = arith.constant dense<0.000000e+00> : vector<8xf32>
    %50 = vector.multi_reduction <add>, %49, %cst_14 [1] : vector<8x128xf32> to vector<8xf32>
    %51 = vector.shape_cast %50 : vector<8xf32> to vector<8x1xf32>
    %cst_15 = arith.constant 0.000000e+00 : f32
    %52 = vector.broadcast %cst_15 : f32 to vector<8x1xf32>
    %53 = arith.subf %52, %51 : vector<8x1xf32>
    %54 = arith.mulf %19, %37 : vector<8x128xf32>
    %cst_16 = arith.constant 1.000000e+00 : f32
    %55 = vector.broadcast %cst_16 : f32 to vector<8x128xf32>
    %56 = arith.subf %55, %19 : vector<8x128xf32>
    %57 = arith.mulf %56, %27 : vector<8x128xf32>
    %58 = arith.addf %54, %57 : vector<8x128xf32>
    %cst_17 = arith.constant 0.000000e+00 : f32
    %59 = vector.broadcast %cst_17 : f32 to vector<8x128xf32>
    %60 = arith.select %8, %58, %59 : vector<8x128xi1>, vector<8x128xf32>
    %cst_18 = arith.constant dense<0.000000e+00> : vector<8xf32>
    %61 = vector.multi_reduction <add>, %60, %cst_18 [1] : vector<8x128xf32> to vector<8xf32>
    %62 = vector.shape_cast %61 : vector<8xf32> to vector<8x1xf32>
    %cst_19 = arith.constant dense<0.000000e+00> : vector<8x128xf32>
    %63 = tpu.matmul %42, %2, %cst_19 {dimension_numbers = #tpu.dot_dimension_numbers<[1], [0], [0], [1], [0, 0, 1, 1], [], []>} : vector<8x128xf32>, vector<128x128xf32>, vector<8x128xf32> -> vector<8x128xf32>
    %64 = arith.addf %14, %63 : vector<8x128xf32>
    %cst_20 = arith.constant -1.000000e+30 : f32
    %65 = vector.broadcast %cst_20 : f32 to vector<8x128xf32>
    %66 = arith.select %13, %64, %65 : vector<8x128xi1>, vector<8x128xf32>
    %cst_21 = arith.constant dense<0xFF800000> : vector<8xf32>
    %67 = vector.multi_reduction <maximumf>, %66, %cst_21 [1] : vector<8x128xf32> to vector<8xf32>
    %68 = vector.shape_cast %67 : vector<8xf32> to vector<8x1xf32>
    %69 = vector.broadcast %68 : vector<8x1xf32> to vector<8x128xf32>
    %70 = arith.subf %64, %69 : vector<8x128xf32>
    %71 = math.exp %70 : vector<8x128xf32>
    %cst_22 = arith.constant 0.000000e+00 : f32
    %72 = vector.broadcast %cst_22 : f32 to vector<8x128xf32>
    %73 = arith.select %13, %71, %72 : vector<8x128xi1>, vector<8x128xf32>
    %cst_23 = arith.constant dense<0.000000e+00> : vector<8xf32>
    %74 = vector.multi_reduction <add>, %73, %cst_23 [1] : vector<8x128xf32> to vector<8xf32>
    %75 = vector.shape_cast %74 : vector<8xf32> to vector<8x1xf32>
    %76 = math.log %75 : vector<8x1xf32>
    %77 = vector.broadcast %76 : vector<8x1xf32> to vector<8x128xf32>
    %78 = arith.subf %70, %77 : vector<8x128xf32>
    %79 = vector.broadcast %75 : vector<8x1xf32> to vector<8x128xf32>
    %80 = arith.divf %73, %79 : vector<8x128xf32>
    %cst_24 = arith.constant 0.000000e+00 : f32
    %81 = vector.broadcast %cst_24 : f32 to vector<8x128xf32>
    %82 = arith.select %13, %0, %81 : vector<8x128xi1>, vector<8x128xf32>
    %83 = arith.mulf %82, %78 : vector<8x128xf32>
    %cst_25 = arith.constant dense<0.000000e+00> : vector<8xf32>
    %84 = vector.multi_reduction <add>, %83, %cst_25 [1] : vector<8x128xf32> to vector<8xf32>
    %85 = vector.shape_cast %84 : vector<8xf32> to vector<8x1xf32>
    %cst_26 = arith.constant 0.000000e+00 : f32
    %86 = vector.broadcast %cst_26 : f32 to vector<8x1xf32>
    %87 = arith.subf %86, %85 : vector<8x1xf32>
    %88 = arith.mulf %80, %78 : vector<8x128xf32>
    %cst_27 = arith.constant dense<0.000000e+00> : vector<8xf32>
    %89 = vector.multi_reduction <add>, %88, %cst_27 [1] : vector<8x128xf32> to vector<8xf32>
    %90 = vector.shape_cast %89 : vector<8xf32> to vector<8x1xf32>
    %cst_28 = arith.constant 0.000000e+00 : f32
    %91 = vector.broadcast %cst_28 : f32 to vector<8x1xf32>
    %92 = arith.subf %91, %90 : vector<8x1xf32>
    %93 = arith.mulf %82, %64 : vector<8x128xf32>
    %cst_29 = arith.constant dense<0.000000e+00> : vector<8xf32>
    %94 = vector.multi_reduction <add>, %93, %cst_29 [1] : vector<8x128xf32> to vector<8xf32>
    %95 = vector.shape_cast %94 : vector<8xf32> to vector<8x1xf32>
    %96 = arith.cmpf oge, %95, %68 : vector<8x1xf32>
    %97 = arith.extui %96 : vector<8x1xi1> to vector<8x1xi32>
    %98 = arith.sitofp %97 : vector<8x1xi32> to vector<8x1xf32>
    %cst_30 = arith.constant 0.000000e+00 : f32
    %99 = vector.broadcast %cst_30 : f32 to vector<8x1xf32>
    %100 = arith.subf %87, %99 : vector<8x1xf32>
    %101 = arith.mulf %100, %53 : vector<8x1xf32>
    %cst_31 = arith.constant 0.000000e+00 : f32
    %102 = vector.broadcast %cst_31 : f32 to vector<8x1xf32>
    %103 = arith.subf %102, %62 : vector<8x1xf32>
    %cst_32 = arith.constant 1.000000e-01 : f32
    %104 = vector.broadcast %cst_32 : f32 to vector<8x1xf32>
    %105 = arith.mulf %103, %104 : vector<8x1xf32>
    %106 = arith.addf %101, %105 : vector<8x1xf32>
    %107 = arith.addf %106, %87 : vector<8x1xf32>
    %cst_33 = arith.constant dense<0.000000e+00> : vector<1xf32>
    %108 = vector.multi_reduction <add>, %107, %cst_33 [0] : vector<8x1xf32> to vector<1xf32>
    %109 = vector.shape_cast %108 : vector<1xf32> to vector<1x1xf32>
    %cst_34 = arith.constant 1.250000e-01 : f32
    %110 = vector.broadcast %cst_34 : f32 to vector<1x1xf32>
    %111 = arith.mulf %109, %110 : vector<1x1xf32>
    %112 = vector.shape_cast %111 : vector<1x1xf32> to vector<1x1xf32>
    %113 = vector.broadcast %112 : vector<1x1xf32> to vector<8x1xf32>
    %cst_35 = arith.constant 0.000000e+00 : f32
    %114 = vector.broadcast %cst_35 : f32 to vector<8x128xf32>
    %115 = arith.select %8, %14, %114 : vector<8x128xi1>, vector<8x128xf32>
    %c0_i32 = arith.constant 0 : i32
    %116 = vector.broadcast %c0_i32 : i32 to vector<8x128xi32>
    %117 = arith.cmpi eq, %3, %116 : vector<8x128xi32>
    %118 = vector.shape_cast %87 : vector<8x1xf32> to vector<8x1xf32>
    %119 = vector.broadcast %118 : vector<8x1xf32> to vector<8x128xf32>
    %120 = arith.select %117, %119, %115 : vector<8x128xi1>, vector<8x128xf32>
    %c1_i32 = arith.constant 1 : i32
    %121 = vector.broadcast %c1_i32 : i32 to vector<8x128xi32>
    %122 = arith.cmpi eq, %3, %121 : vector<8x128xi32>
    %123 = vector.shape_cast %62 : vector<8x1xf32> to vector<8x1xf32>
    %124 = vector.broadcast %123 : vector<8x1xf32> to vector<8x128xf32>
    %125 = arith.select %122, %124, %120 : vector<8x128xi1>, vector<8x128xf32>
    %c2_i32 = arith.constant 2 : i32
    %126 = vector.broadcast %c2_i32 : i32 to vector<8x128xi32>
    %127 = arith.cmpi eq, %3, %126 : vector<8x128xi32>
    %128 = vector.shape_cast %92 : vector<8x1xf32> to vector<8x1xf32>
    %129 = vector.broadcast %128 : vector<8x1xf32> to vector<8x128xf32>
    %130 = arith.select %127, %129, %125 : vector<8x128xi1>, vector<8x128xf32>
    %c3_i32 = arith.constant 3 : i32
    %131 = vector.broadcast %c3_i32 : i32 to vector<8x128xi32>
    %132 = arith.cmpi eq, %3, %131 : vector<8x128xi32>
    %133 = vector.shape_cast %98 : vector<8x1xf32> to vector<8x1xf32>
    %134 = vector.broadcast %133 : vector<8x1xf32> to vector<8x128xf32>
    %135 = arith.select %132, %134, %130 : vector<8x128xi1>, vector<8x128xf32>
    %c4_i32 = arith.constant 4 : i32
    %136 = vector.broadcast %c4_i32 : i32 to vector<8x128xi32>
    %137 = arith.cmpi eq, %3, %136 : vector<8x128xi32>
    %138 = vector.shape_cast %53 : vector<8x1xf32> to vector<8x1xf32>
    %139 = vector.broadcast %138 : vector<8x1xf32> to vector<8x128xf32>
    %140 = arith.select %137, %139, %135 : vector<8x128xi1>, vector<8x128xf32>
    %c5_i32 = arith.constant 5 : i32
    %141 = vector.broadcast %c5_i32 : i32 to vector<8x128xi32>
    %142 = arith.cmpi eq, %3, %141 : vector<8x128xi32>
    %143 = vector.shape_cast %107 : vector<8x1xf32> to vector<8x1xf32>
    %144 = vector.broadcast %143 : vector<8x1xf32> to vector<8x128xf32>
    %145 = arith.select %142, %144, %140 : vector<8x128xi1>, vector<8x128xf32>
    %c6_i32 = arith.constant 6 : i32
    %146 = vector.broadcast %c6_i32 : i32 to vector<8x128xi32>
    %147 = arith.cmpi eq, %3, %146 : vector<8x128xi32>
    %148 = vector.shape_cast %113 : vector<8x1xf32> to vector<8x1xf32>
    %149 = vector.broadcast %148 : vector<8x1xf32> to vector<8x128xf32>
    %150 = arith.select %147, %149, %145 : vector<8x128xi1>, vector<8x128xf32>
    %c0_36 = arith.constant 0 : index
    %c0_37 = arith.constant 0 : index
    %151 = vector.load %arg2[%c0_36, %c0_37] : memref<8x128xf32, #tpu.memory_space<vmem>>, vector<8x128xf32>
    tpu.vector_store %arg2[%c0_36, %c0_37], %150 {strides = array<i32>} : memref<8x128xf32, #tpu.memory_space<vmem>>, vector<8x128xf32>,
    return
  }
}

</mosaic_0001>

<bundles_post_ra>
// kernel: tpu_custom_call.1
= control target key start
LH: loop header
LB: loop body
LE: loop exit
PB: predicated region body
PF: predicated region fallthrough
CT: control target
= control target key end

     0   :  { %7 = vsyncpa [#allocation3], 0  ;;  %s741_s0 = inlined_call_operand.hbm [shape: f32[8,128], index: 0, kind: input, shape index: {}]   ;;  %s742_s1 = inlined_call_operand.hbm [shape: f32[256,128], index: 1, kind: input, shape index: {}]   ;;  %s743_s2 = inlined_call_operand.hbm [shape: f32[8,128], index: 2, kind: output, shape index: {}]  }
   0x1   :  { %8 = vsyncpa [#allocation6], 0 }
   0x2   :  { %9 = vsyncpa [#allocation4], 0  ;;  %s602_s9 = smov [#allocation2]   ;;  %s603_s11 = smov [#allocation5]  }
   0x3   :  { %s16_s10 = sshll.u32 %s602_s9, 4  ;;  %s25_s12 = sshll.u32 %s603_s11, 4  ;;  %s17_s10 = int_to_ptr.vmem [resolvable:$true] %s16_s10  ;;  %s626_s12 = int_to_ptr.vmem [resolvable:$true] %s25_s12 }
   0x4   :  { %s530_s15 = scalar_lea.hbm %s741_s0, 128 }
   0x5   :  { %p531_p0 = scmp.ne.s32.totalorder %s741_s0, %s530_s15  ;;  %p534_p1 = scmp.lt.u32.totalorder %s530_s15, %s741_s0 }
   0x7   :  { %p536_p2 = pnand %p534_p1, %p531_p0 }
   0x9   :  { %539 = shalt.err (!%p536_p2)
}
   0xa   :  { %s540_s20 = scalar_lea.vmem %s17_s10, 128  ;;  %p545_p4 = scmp.lt.s32.totalorder %s17_s10, %s17_s10 }
   0xb   :  { %p541_p3 = scmp.ne.s32.totalorder %s17_s10, %s540_s20  ;;  %p546_p5 = scmp.lt.s32.totalorder %s540_s20, %s540_s20 }
   0xd   :  { %p547_p6 = por %p546_p5, %p545_p4 }
   0xf   :  { %p548_p7 = pnand %p547_p6, %p541_p3 }
  0x11   :  { %551 = shalt.err (!%p548_p7)
}
  0x12   :  { %19 = dma.hbm_to_vmem [thread:$0]  %s741_s0, 128, %s17_s10, [#allocation3]  }
  0x13   :  { %s552_s25 = scalar_lea.hbm %s742_s1, 4096 }
  0x14   :  { %p553_p8 = scmp.ne.s32.totalorder %s742_s1, %s552_s25  ;;  %p556_p9 = scmp.lt.u32.totalorder %s552_s25, %s742_s1 }
  0x16   :  { %p558_p10 = pnand %p556_p9, %p553_p8 }
  0x18   :  { %561 = shalt.err (!%p558_p10)
}
  0x19   :  { %s562_s30 = scalar_lea.vmem %s626_s12, 4096  ;;  %p567_p12 = scmp.lt.s32.totalorder %s626_s12, %s626_s12 }
  0x1a   :  { %p563_p11 = scmp.ne.s32.totalorder %s626_s12, %s562_s30  ;;  %p568_p13 = scmp.lt.s32.totalorder %s562_s30, %s562_s30 }
  0x1c   :  { %p569_p0 = por %p568_p13, %p567_p12 }
  0x1e   :  { %p570_p1 = pnand %p569_p0, %p563_p11 }
  0x20   :  { %573 = shalt.err (!%p570_p1)
}
  0x21   :  { %s604_s0 = smov 128   ;;  %s605_s3 = smov 8  }
  0x22   :  { %31 = dma.hbm_to_vmem [thread:$0]  %s742_s1, 4096, %s626_s12, [#allocation6], %s604_s0, %s604_s0, %s605_s3  }
  0x23   :  { %596 = dma.done.wait [#allocation3], 128  }
  0x24   :  { %597 = vsyncadd [#allocation3], 4294967168 }
  0x25   :  { %598 = dma.done.wait [#allocation6], 4096  }
  0x26   :  { %599 = vsyncadd [#allocation6], 4294963200  ;;  %v606_v0 = vmov 0.0|0.0   ;;  %vm607_vm0 = vmmov 0   ;;  %v608_v1 = vmov 0.0   ;;  %v39_v2 = vld [vmem:[#allocation5] sm:$0xff]  ;;  %v71_v51 = vlaneseq }
  0x27   :  { %455 = vmatprep.subr.bf16.mxu0 %v606_v0  ;;  %417 = vmatprep.mubr.msk.f32.mxu0 %vm607_vm0, %v608_v1  ;;  %v40_v3 = vld [vmem:[#allocation5 + $0x8] sm:$0xff]  ;;  %v41_v4 = vld [vmem:[#allocation5 + $0x10] sm:$0xff]  ;;  %v42_v6 = vld [vmem:[#allocation5 + $0x18] sm:$0xff]  ;;  %s610_s1 = smov [#allocation7]  }
  0x28   :  { %479 = vmatprep.subr.bf16.mxu1 %v606_v0  ;;  %452 = vmatprep.mubr.msk.f32.mxu1 %vm607_vm0, %v608_v1  ;;  %v456_v5 = vpack.c.bf16 %v40_v3, %v39_v2  ;;  %v459_v7 = vpack.c.bf16 %v42_v6, %v41_v4  ;;  %v43_v8 = vld [vmem:[#allocation5 + $0x20] sm:$0xff]  ;;  %v44_v9 = vld [vmem:[#allocation5 + $0x28] sm:$0xff]  ;;  %v45_v14 = vld [vmem:[#allocation5 + $0x30] sm:$0xff]  ;;  %v678_v52 = vand.u32 127, %v71_v51  ;;  %s338_s6 = sshll.u32 %s610_s1, 4  ;;  %s339_s6 = int_to_ptr.vmem [resolvable:$true] %s338_s6 }
  0x29   :  { %v55_v10 = vld [vmem:[#allocation5 + $0x80] sm:$0xff]  ;;  %v56_v11 = vld [vmem:[#allocation5 + $0x88] sm:$0xff]  ;;  %v462_v12 = vpack.c.bf16 %v44_v9, %v43_v8  ;;  %v46_v15 = vld [vmem:[#allocation5 + $0x38] sm:$0xff]  ;;  %s574_s7 = scalar_lea.vmem %s339_s6, 128  ;;  %p579_p3 = scmp.lt.s32.totalorder %s339_s6, %s339_s6 }
  0x2a   :  { %457 = vmatpush3.bf16.msra.mxu0 %v456_v5  ;;  %v480_v13 = vpack.c.bf16 %v56_v11, %v55_v10  ;;  %v465_v16 = vpack.c.bf16 %v46_v15, %v45_v14  ;;  %v47_v17 = vld [vmem:[#allocation5 + $0x40] sm:$0xff]  ;;  %v48_v18 = vld [vmem:[#allocation5 + $0x48] sm:$0xff]  ;;  %v49_v20 = vld [vmem:[#allocation5 + $0x50] sm:$0xff]  ;;  %vm73_vm1 = vcmp.ge.s32.totalorder %v678_v52, 80  ;;  %vm74_vm2 = vcmp.lt.s32.totalorder %v678_v52, 96  ;;  %p575_p2 = scmp.ne.s32.totalorder %s339_s6, %s574_s7  ;;  %p580_p4 = scmp.lt.s32.totalorder %s574_s7, %s574_s7 }
  0x2b   :  { %458 = vmatprep.subr.bf16.mxu0 %v606_v0  ;;  %v468_v19 = vpack.c.bf16 %v48_v18, %v47_v17  ;;  %v50_v21 = vld [vmem:[#allocation5 + $0x58] sm:$0xff]  ;;  %v51_v23 = vld [vmem:[#allocation5 + $0x60] sm:$0xff]  ;;  %v52_v24 = vld [vmem:[#allocation5 + $0x68] sm:$0xff]  ;;  %vm76_vm8 = vcmp.ge.s32.totalorder %v678_v52, 64  ;;  %vm77_vm9 = vcmp.lt.s32.totalorder %v678_v52, 72  ;;  %vm317_vm11 = vcmp.eq.s32.totalorder %v678_v52, 0 }
  0x2c   :  { %481 = vmatpush3.bf16.msra.mxu1 %v480_v13  ;;  %v471_v22 = vpack.c.bf16 %v50_v21, %v49_v20  ;;  %v474_v25 = vpack.c.bf16 %v52_v24, %v51_v23  ;;  %v53_v26 = vld [vmem:[#allocation5 + $0x70] sm:$0xff]  ;;  %v54_v27 = vld [vmem:[#allocation5 + $0x78] sm:$0xff]  ;;  %v59_v33 = vld [vmem:[#allocation5 + $0xa0] sm:$0xff]  ;;  %v609_v13 = vmov 1.0   ;;  %vm319_vm12 = vcmp.eq.s32.totalorder %v678_v52, 1  ;;  %p581_p5 = por %p580_p4, %p579_p3 }
  0x2d   :  { %482 = vmatprep.subr.bf16.mxu1 %v606_v0  ;;  %v477_v28 = vpack.c.bf16 %v54_v27, %v53_v26  ;;  %v669_v29 = vld [vmem:[#allocation2] sm:$0xff]  ;;  %v57_v30 = vld [vmem:[#allocation5 + $0x90] sm:$0xff]  ;;  %v60_v34 = vld [vmem:[#allocation5 + $0xa8] sm:$0xff]  ;;  %vm321_vm13 = vcmp.eq.s32.totalorder %v678_v52, 2  ;;  %vm323_vm15 = vcmp.eq.s32.totalorder %v678_v52, 3  ;;  %vm325_vm0 = vcmp.eq.s32.totalorder %v678_v52, 4 }
  0x2e   :  { %460 = vmatpush3.bf16.msra.mxu0 %v459_v7  ;;  %v58_v31 = vld [vmem:[#allocation5 + $0x98] sm:$0xff]  ;;  %v486_v35 = vpack.c.bf16 %v60_v34, %v59_v33  ;;  %v61_v36 = vld [vmem:[#allocation5 + $0xb0] sm:$0xff]  ;;  %v63_v39 = vld [vmem:[#allocation5 + $0xc0] sm:$0xff]  ;;  %p582_p6 = pnand %p581_p5, %p575_p2 }
  0x2f   :  { %461 = vmatprep.subr.bf16.mxu0 %v606_v0  ;;  %v483_v32 = vpack.c.bf16 %v58_v31, %v57_v30  ;;  %v62_v37 = vld [vmem:[#allocation5 + $0xb8] sm:$0xff]  ;;  %v64_v40 = vld [vmem:[#allocation5 + $0xc8] sm:$0xff]  ;;  %v65_v42 = vld [vmem:[#allocation5 + $0xd0] sm:$0xff] }
  0x30   :  { %v489_v38 = vpack.c.bf16 %v62_v37, %v61_v36  ;;  %v492_v41 = vpack.c.bf16 %v64_v40, %v63_v39  ;;  %v66_v43 = vld [vmem:[#allocation5 + $0xd8] sm:$0xff]  ;;  %v67_v45 = vld [vmem:[#allocation5 + $0xe0] sm:$0xff]  ;;  %v68_v46 = vld [vmem:[#allocation5 + $0xe8] sm:$0xff] }
  0x31   :  { %484 = vmatpush3.bf16.msra.mxu1 %v483_v32  ;;  %v495_v44 = vpack.c.bf16 %v66_v43, %v65_v42  ;;  %v498_v47 = vpack.c.bf16 %v68_v46, %v67_v45  ;;  %v69_v48 = vld [vmem:[#allocation5 + $0xf0] sm:$0xff]  ;;  %v70_v49 = vld [vmem:[#allocation5 + $0xf8] sm:$0xff]  ;;  %vm682_vm3 = vmand %vm73_vm1, %vm74_vm2  ;;  %vm327_vm1 = vcmp.eq.s32.totalorder %v678_v52, 5  ;;  %vm329_vm2 = vcmp.eq.s32.totalorder %v678_v52, 6 }
  0x32   :  { %463 = vmatpush3.bf16.msra.mxu0 %v462_v12  ;;  %485 = vmatprep.subr.bf16.mxu1 %v606_v0  ;;  %v501_v50 = vpack.c.bf16 %v70_v49, %v69_v48  ;;  %vm705_vm10 = vmand %vm76_vm8, %vm77_vm9 }
  0x33   :  { %464 = vmatprep.subr.bf16.mxu0 %v606_v0 }
  0x35   :  { %487 = vmatpush3.bf16.msra.mxu1 %v486_v35 }
  0x36   :  { %466 = vmatpush3.bf16.msra.mxu0 %v465_v16  ;;  %488 = vmatprep.subr.bf16.mxu1 %v606_v0 }
  0x37   :  { %467 = vmatprep.subr.bf16.mxu0 %v606_v0 }
  0x39   :  { %490 = vmatpush3.bf16.msra.mxu1 %v489_v38 }
  0x3a   :  { %469 = vmatpush3.bf16.msra.mxu0 %v468_v19  ;;  %491 = vmatprep.subr.bf16.mxu1 %v606_v0 }
  0x3b   :  { %470 = vmatprep.subr.bf16.mxu0 %v606_v0 }
  0x3d   :  { %493 = vmatpush3.bf16.msra.mxu1 %v492_v41 }
  0x3e   :  { %472 = vmatpush3.bf16.msra.mxu0 %v471_v22  ;;  %494 = vmatprep.subr.bf16.mxu1 %v606_v0 }
  0x3f   :  { %473 = vmatprep.subr.bf16.mxu0 %v606_v0 }
  0x41   :  { %496 = vmatpush3.bf16.msra.mxu1 %v495_v44 }
  0x42   :  { %475 = vmatpush3.bf16.msra.mxu0 %v474_v25  ;;  %497 = vmatprep.subr.bf16.mxu1 %v606_v0 }
  0x43   :  { %476 = vmatprep.subr.bf16.mxu0 %v606_v0 }
  0x45   :  { %499 = vmatpush3.bf16.msra.mxu1 %v498_v47 }
  0x46   :  { %478 = vmatpush3.bf16.msra.mxu0 %v477_v28  ;;  %500 = vmatprep.subr.bf16.mxu1 %v606_v0 }
  0x49   :  { %418 = vmatmul.mubr.f32.vlgmr.msra.gmra.mrb[0].mxu0 %v669_v29  ;;  %502 = vmatpush3.bf16.msra.mxu1 %v501_v50 }
 0x11c   :  { %v686_v54 = vpop.f32.mrb[0].mxu0 }
 0x11d   :  { %v348_v55 = vmul.f32 -1.442695, %v686_v54  ;;  %v156_v56 = vand.u32 2147483647, %v686_v54  ;;  %v419_v57 = vpop.f32.mrb[1].mxu0  ;;  %v170_v58 = vsub.f32 0.0, %v686_v54 }
 0x11e   :  { %v316_v59 = vsel %vm682_vm3, %v686_v54, 0.0  ;;  %v155_v20 = vmax.f32 %v686_v54, 0.0 }
 0x11f   :  { %512 = vpow2.f32 %v348_v55  ;;  %v157_v60 = vsub.f32 0.0, %v156_v56  ;;  %v172_v61 = vand.u32 2147483647, %v170_v58  ;;  %v171_v26 = vmax.f32 %v170_v58, 0.0 }
 0x121   :  { %v158_v62 = vmul.f32 1.442695, %v157_v60  ;;  %v173_v63 = vsub.f32 0.0, %v172_v61  ;;  %v289_v60 = vsel %vm705_vm10, %v669_v29, 0.0 }
 0x123   :  { %514 = vpow2.f32 %v158_v62  ;;  %v174_v0 = vmul.f32 1.442695, %v173_v63 }
 0x125   :  { %516 = vpow2.f32 %v174_v0 }
 0x129   :  { %v513_v2 = vpop.eup %512 }
 0x12a   :  { %v152_v3 = vadd.f32 1.0, %v513_v2 }
 0x12c   :  { %518 = vrcp.f32 %v152_v3 }
 0x12d   :  { %v515_v4 = vpop.eup %514 }
 0x12e   :  { %v160_v5 = vadd.f32 1.0, %v515_v4  ;;  %v163_v8 = vmul.f32 -0.5, %v515_v4  ;;  %v166_v12 = vand.u32 2147483647, %v515_v4 }
 0x12f   :  { %v517_v6 = vpop.eup %516 }
 0x130   :  { %520 = vlog2.f32 %v160_v5  ;;  %v176_v7 = vadd.f32 1.0, %v517_v6  ;;  %v179_v10 = vmul.f32 -0.5, %v517_v6  ;;  %v164_v11 = vadd.f32 1.0, %v163_v8 }
 0x131   :  { %v182_v18 = vand.u32 2147483647, %v517_v6  ;;  %vm167_vm6 = vcmp.lt.f32.partialorder %v166_v12, 0.0004427343 }
 0x132   :  { %522 = vlog2.f32 %v176_v7  ;;  %v180_v15 = vadd.f32 1.0, %v179_v10  ;;  %v165_v17 = vmul.f32 %v515_v4, %v164_v11 }
 0x133   :  { %vm183_vm7 = vcmp.lt.f32.partialorder %v182_v18, 0.0004427343 }
 0x134   :  { %v181_v24 = vmul.f32 %v517_v6, %v180_v15 }
 0x136   :  { %v519_v9 = vpop.eup %518 }
 0x137   :  { %vm186_vm4 = vcmp.lt.f32.partialorder %v669_v29, %v519_v9  ;;  %v198_v34 = vsub.f32 1.0, %v519_v9 }
 0x138   :  { %vm187_vm5 = vmand %vm682_vm3, %vm186_vm4 }
 0x139   :  { %453 = vmatmul.mubr.msk.f32.vlgmr.msra.gmra.mrb[0].mxu1 %vm187_vm5, %v609_v13  ;;  %v188_v22 = vsel %vm187_vm5, 1.0, %v608_v1 }
 0x13a   :  { %v521_v14 = vpop.eup %520  ;;  %v190_v28 = vsub.f32 1.0, %v188_v22 }
 0x13b   :  { %v162_v16 = vmul.f32 0.6931472, %v521_v14 }
 0x13c   :  { %v523_v19 = vpop.eup %522 }
 0x13d   :  { %v168_v21 = vsel %vm167_vm6, %v165_v17, %v162_v16  ;;  %v178_v23 = vmul.f32 0.6931472, %v523_v19 }
 0x13e   :  { %v169_v25 = vadd.f32 %v168_v21, %v155_v20 }
 0x13f   :  { %v184_v27 = vsel %vm183_vm7, %v181_v24, %v178_v23 }
 0x140   :  { %v185_v30 = vadd.f32 %v184_v27, %v171_v26  ;;  %v191_v32 = vmul.f32 %v190_v28, %v169_v25  ;;  %v199_v36 = vmul.f32 %v198_v34, %v169_v25 }
 0x142   :  { %v189_v31 = vmul.f32 %v188_v22, %v185_v30  ;;  %v197_v33 = vmul.f32 %v519_v9, %v185_v30 }
 0x144   :  { %v192_v35 = vadd.f32 %v191_v32, %v189_v31  ;;  %v200_v38 = vadd.f32 %v199_v36, %v197_v33 }
 0x146   :  { %v193_v37 = vsel %vm682_vm3, %v192_v35, 0.0  ;;  %v201_v39 = vsel %vm682_vm3, %v200_v38, 0.0 }
 0x147   :  { %194 = vadd.xlane.f32.xlu1 %v193_v37 }
 0x14b   :  { %202 = vadd.xlane.f32.xlu1 %v201_v39 }
 0x1d4   :  { %v195_v0 = vpop.xlane.xlu1 %194 }
 0x1d5   :  { %v196_v5 = vsub.f32 0.0, %v195_v0 }
 0x1d8   :  { %v203_v2 = vpop.xlane.xlu1 %202 }
 0x1d9   :  { %v305_v3 = vsub.f32 0.0, %v203_v2 }
 0x1db   :  { %v306_v7 = vmul.f32 0.1, %v305_v3 }
 0x20c   :  { %v270_v40 = vpop.f32.mrb[0].mxu1 }
 0x20d   :  { %v274_v42 = vadd.f32 %v270_v40, %v686_v54  ;;  %v454_v43 = vpop.f32.mrb[1].mxu1 }
 0x20f   :  { %v275_v44 = vsel %vm705_vm10, %v274_v42, -1e+30  ;;  %v298_v63 = vmul.f32 %v289_v60, %v274_v42 }
 0x210   :  { %276 = vmax.xlane.f32.xlu0 %v275_v44 }
 0x29d   :  { %v277_v45 = vpop.xlane.xlu0 %276 }
 0x29e   :  { %v278_v46 = vsub.f32 %v274_v42, %v277_v45 }
 0x2a0   :  { %v279_v47 = vmul.f32 1.442695, %v278_v46 }
 0x2a2   :  { %524 = vpow2.f32 %v279_v47 }
 0x2ac   :  { %v525_v48 = vpop.eup %524 }
 0x2ad   :  { %v281_v49 = vsel %vm705_vm10, %v525_v48, 0.0 }
 0x2ae   :  { %282 = vadd.xlane.f32.xlu0 %v281_v49 }
 0x33b   :  { %v283_v50 = vpop.xlane.xlu0 %282 }
 0x33c   :  { %526 = vlog2.f32 %v283_v50 }
 0x33d   :  { %528 = vrcp.f32 %v283_v50 }
 0x346   :  { %v527_v51 = vpop.eup %526 }
 0x347   :  { %v529_v55 = vpop.eup %528  ;;  %v285_v56 = vmul.f32 0.6931472, %v527_v51 }
 0x348   :  { %v288_v58 = vmul.f32 %v529_v55, %v281_v49 }
 0x349   :  { %v286_v57 = vsub.f32 %v278_v46, %v285_v56 }
 0x34b   :  { %v290_v61 = vmul.f32 %v289_v60, %v286_v57  ;;  %v294_v62 = vmul.f32 %v288_v58, %v286_v57 }
 0x34d   :  { %291 = vadd.xlane.f32.xlu0 %v290_v61  ;;  %295 = vadd.xlane.f32.xlu1 %v294_v62 }
 0x351   :  { %299 = vadd.xlane.f32.xlu0 %v298_v63 }
 0x3da   :  { %v292_v4 = vpop.xlane.xlu0 %291  ;;  %v296_v12 = vpop.xlane.xlu1 %295 }
 0x3db   :  { %v293_v6 = vsub.f32 0.0, %v292_v4  ;;  %v297_v16 = vsub.f32 0.0, %v296_v12 }
 0x3dd   :  { %v304_v8 = vmul.f32 %v293_v6, %v196_v5  ;;  %v318_v29 = vsel %vm317_vm11, %v293_v6, %v316_v59 }
 0x3de   :  { %v300_v11 = vpop.xlane.xlu0 %299  ;;  %v320_v14 = vsel %vm319_vm12, %v203_v2, %v318_v29 }
 0x3df   :  { %v307_v9 = vadd.f32 %v306_v7, %v304_v8  ;;  %vm301_vm14 = vcmp.ge.f32.partialorder %v300_v11, %v277_v45  ;;  %v322_v18 = vsel %vm321_vm13, %v297_v16, %v320_v14 }
 0x3e0   :  { %v350_v53 = vsel %vm301_vm14, 1.0, %v608_v1 }
 0x3e1   :  { %v308_v10 = vadd.f32 %v307_v9, %v293_v6  ;;  %v324_v54 = vsel %vm323_vm15, %v350_v53, %v322_v18 }
 0x3e2   :  { %v326_v20 = vsel %vm325_vm0, %v196_v5, %v324_v54 }
 0x3e3   :  { %v309_v13 = vrot.slane %v308_v10, 4  ;;  %v328_v23 = vsel %vm327_vm1, %v308_v10, %v326_v20 }
 0x3e5   :  { %v310_v15 = vadd.f32 %v309_v13, %v308_v10 }
 0x3e7   :  { %v311_v17 = vrot.slane %v310_v15, 2 }
 0x3e9   :  { %v312_v19 = vadd.f32 %v311_v17, %v310_v15 }
 0x3eb   :  { %v313_v59 = vrot.slane %v312_v19, 1 }
 0x3ed   :  { %v314_v21 = vadd.f32 %v313_v59, %v312_v19 }
 0x3ef   :  { %v315_v22 = vmul.f32 0.125, %v314_v21 }
 0x3f1   :  { %v330_v24 = vsel %vm329_vm2, %v315_v22, %v328_v23 }
 0x3f2   :  { %331 = vst [vmem:[#allocation7] sm:$0xff] %v330_v24 }
 0x3f3   :  { %585 = shalt.err (!%p582_p6)
}
 0x3f4   :  { %s586_s10 = scalar_lea.hbm %s743_s2, 128 }
 0x3f5   :  { %p587_p7 = scmp.ne.s32.totalorder %s743_s2, %s586_s10  ;;  %p590_p8 = scmp.lt.u32.totalorder %s586_s10, %s743_s2 }
 0x3f7   :  { %p592_p9 = pnand %p590_p8, %p587_p7 }
 0x3f9   :  { %595 = shalt.err (!%p592_p9)
}
 0x3fa   :  { %341 = dma.vmem_to_hbm [thread:$0]  %s339_s6, 128, %s743_s2, [#allocation4]  }
 0x3fb   :  { %600 = dma.done.wait [#allocation4], 128  }
 0x3fc   :  { %601 = vsyncadd [#allocation4], 4294967168 }
 0x3fd   :  { %345 = vsyncpa [#allocation3], 1 }
 0x3fe   :  { %346 = vsyncpa [#allocation6], 1 }
 0x3ff   :  { %347 = vsyncpa [#allocation4], 1 }

</bundles_post_ra>
